<compile_context>
chip_gen: v7x
topology: tpu7x:2x2x1
jax: 0.10.0
libtpu: 0.0.40
codegen_flags: <defaults>
</compile_context>

<pallas_src>
import functools
import math

import jax
import jax.numpy as jnp
from jax.experimental import pallas as pl
from jax.experimental.pallas import tpu as pltpu


def _glove_kernel(wi_ref, wj_ref, sc_ref, out_ref, *, alpha, log_x_max):
    # (E, TB) embedding tiles; explicit upcast so bf16-on-the-wire inputs
    # still compute in f32 (required on v5e, harmless elsewhere).
    wi = wi_ref[...].astype(jnp.float32)
    wj = wj_ref[...].astype(jnp.float32)
    sc = sc_ref[...].astype(jnp.float32)            # (3, TB): bias_i, bias_j, x
    bi = sc[0:1, :]                                 # (1, TB)
    bj = sc[1:2, :]                                 # (1, TB)
    x = sc[2:3, :]                                  # (1, TB)

    # dot(w_i, w~_j) over the embedding dim (sublane-axis reduction -> XLU).
    dot = jnp.sum(wi * wj, axis=0, keepdims=True)   # (1, TB)

    logx = jnp.log(x)                               # reused below
    err = dot + bi + bj - logx                      # (1, TB)

    # f(x) = clamp((x/x_max)^alpha, 0, 1) = min(exp(alpha*(log x - log x_max)), 1)
    # Reuses log(x) (one EUP transcendental saved); lower clamp redundant (x>0).
    # TODO(synk): torch uses float_power (f64 intermediate); we compute in f32.
    wgt = jnp.minimum(jnp.exp(alpha * (logx - log_x_max)), 1.0)

    out_ref[...] = wgt * err * err                  # lane-dense (1, TB) store


def glove_forward(weight, weight_tilde, bias, bias_tilde, i, j, x,
                  *, x_max, alpha, tile_batch=2048):
    """GloVe forward: gathers (XLA glue) + Pallas kernel for the hot path."""
    B = i.shape[0]
    E = weight.shape[1]

    # --- index glue (stays in XLA): gather rows, batch on the lane axis.
    # Native parameter dtype is kept on the wire (no wrapper-side f32 copies).
    # TODO(synk): fuse the gather into the kernel (scalar-prefetched indices +
    # manual row DMA) to avoid materializing the (E, B) slabs in HBM.
    wi_t = jnp.take(weight, i, axis=0).T            # (E, B)
    wj_t = jnp.take(weight_tilde, j, axis=0).T      # (E, B)
    bi = jnp.take(bias, i, axis=0).astype(jnp.float32)
    bj = jnp.take(bias_tilde, j, axis=0).astype(jnp.float32)
    xf = x.astype(jnp.float32)

    # --- batch tiling (pad the ragged tail; padded lanes contribute 0 loss).
    if B <= tile_batch:
        tb, Bp = B, B
    else:
        tb = tile_batch
        Bp = ((B + tb - 1) // tb) * tb
    pad = Bp - B
    if pad:
        # zeros => err == 0 => zero contribution; x padded with 1 keeps log finite.
        wi_t = jnp.pad(wi_t, ((0, 0), (0, pad)))
        wj_t = jnp.pad(wj_t, ((0, 0), (0, pad)))
        bi = jnp.pad(bi, (0, pad))
        bj = jnp.pad(bj, (0, pad))
        xf = jnp.pad(xf, (0, pad), constant_values=1.0)

    scal = jnp.stack([bi, bj, xf], axis=0)          # (3, Bp): one packed slab

    kernel = functools.partial(_glove_kernel, alpha=float(alpha),
                               log_x_max=float(math.log(x_max)))
    num_tiles = Bp // tb

    per_example = pl.pallas_call(
        kernel,
        out_shape=jax.ShapeDtypeStruct((1, Bp), jnp.float32),
        grid=(num_tiles,),
        in_specs=[
            pl.BlockSpec((E, tb), lambda b: (0, b)),   # w_i tile
            pl.BlockSpec((E, tb), lambda b: (0, b)),   # w~_j tile
            pl.BlockSpec((3, tb), lambda b: (0, b)),   # packed scalars
        ],
        out_specs=pl.BlockSpec((1, tb), lambda b: (0, b)),
        compiler_params=pltpu.CompilerParams(
            dimension_semantics=("parallel",)),
    )(wi_t, wj_t, scal)

    # Tiny (1, B) reduction; padded lanes are exact zeros, divide by true B.
    return jnp.sum(per_example) * (1.0 / B)


def reference_forward(weight, weight_tilde, bias, bias_tilde, i, j, x,
                      *, x_max, alpha):
    wi = weight[i]
    wj = weight_tilde[j]
    dot = jnp.sum(wi * wj, axis=1)
    err = dot + bias[i] + bias_tilde[j] - jnp.log(x)
    wgt = jnp.clip(jnp.power(x / x_max, alpha), 0.0, 1.0)
    return jnp.mean(wgt * err * err)


if __name__ == "__main__":
    vocab_size = 64
    embedding_size = 32
    x_max = 100.0
    alpha = 0.75

    key = jax.random.PRNGKey(0)
    k_w, k_wt, k_b, k_bt, k_i, k_j, k_x = jax.random.split(key, 7)

    weight = jax.random.normal(k_w, (vocab_size, embedding_size), jnp.float32)
    weight_tilde = jax.random.normal(k_wt, (vocab_size, embedding_size), jnp.float32)
    bias = jax.random.normal(k_b, (vocab_size,), jnp.float32)
    bias_tilde = jax.random.normal(k_bt, (vocab_size,), jnp.float32)

    # --- small batch: single tile path ---
    batch = 8
    i = jax.random.randint(k_i, (batch,), 0, vocab_size, jnp.int32)
    j = jax.random.randint(k_j, (batch,), 0, vocab_size, jnp.int32)
    x = jax.random.uniform(k_x, (batch,), jnp.float32, minval=1.0, maxval=50.0)

    out = glove_forward(weight, weight_tilde, bias, bias_tilde, i, j, x,
                        x_max=x_max, alpha=alpha)
    out = jax.block_until_ready(out)
    ref = reference_forward(weight, weight_tilde, bias, bias_tilde, i, j, x,
                            x_max=x_max, alpha=alpha)
    assert jnp.allclose(out, ref, rtol=1e-4, atol=1e-5), (out, ref)

    # --- larger batch: exercises multi-tile grid + ragged-tail padding ---
    batch2 = 200
    k_i2, k_j2, k_x2 = jax.random.split(jax.random.PRNGKey(1), 3)
    i2 = jax.random.randint(k_i2, (batch2,), 0, vocab_size, jnp.int32)
    j2 = jax.random.randint(k_j2, (batch2,), 0, vocab_size, jnp.int32)
    x2 = jax.random.uniform(k_x2, (batch2,), jnp.float32, minval=1.0, maxval=80.0)

    out2 = glove_forward(weight, weight_tilde, bias, bias_tilde, i2, j2, x2,
                         x_max=x_max, alpha=alpha, tile_batch=128)
    out2 = jax.block_until_ready(out2)
    ref2 = reference_forward(weight, weight_tilde, bias, bias_tilde, i2, j2, x2,
                             x_max=x_max, alpha=alpha)
    assert jnp.allclose(out2, ref2, rtol=1e-4, atol=1e-5), (out2, ref2)

    print("KERNEL_OK")
</pallas_src>

<mosaic_0001>
module attributes {stable_mosaic.version = 11 : i64} {
  func.func @_glove_kernel(%arg0: i32, %arg1: memref<32x8xf32, #tpu.memory_space<vmem>>, %arg2: memref<32x8xf32, #tpu.memory_space<vmem>>, %arg3: memref<3x8xf32, #tpu.memory_space<vmem>>, %arg4: memref<1x8xf32, #tpu.memory_space<vmem>>) attributes {dimension_semantics = [#tpu.dimension_semantics<parallel>], iteration_bounds = array<i64: 1>, scalar_prefetch = 0 : i64, scratch_operands = 0 : i64, tpu.core_type = #tpu.core_type<tc>, window_params = [{transform_indices = @transform_0, window_bounds = array<i64: 32, 8>}, {transform_indices = @transform_1, window_bounds = array<i64: 32, 8>}, {transform_indices = @transform_2, window_bounds = array<i64: 3, 8>}, {transform_indices = @transform_3, window_bounds = array<i64: 1, 8>}]} {
    %c0 = arith.constant 0 : index
    %c0_0 = arith.constant 0 : index
    %0 = vector.load %arg1[%c0, %c0_0] : memref<32x8xf32, #tpu.memory_space<vmem>>, vector<32x8xf32>
    %c0_1 = arith.constant 0 : index
    %c0_2 = arith.constant 0 : index
    %1 = vector.load %arg2[%c0_1, %c0_2] : memref<32x8xf32, #tpu.memory_space<vmem>>, vector<32x8xf32>
    %c0_3 = arith.constant 0 : index
    %c0_4 = arith.constant 0 : index
    %2 = vector.load %arg3[%c0_3, %c0_4] : memref<3x8xf32, #tpu.memory_space<vmem>>, vector<3x8xf32>
    %3 = vector.extract_strided_slice %2 {offsets = [0, 0], sizes = [1, 8], strides = [1, 1]} : vector<3x8xf32> to vector<1x8xf32>
    %4 = vector.extract_strided_slice %2 {offsets = [1, 0], sizes = [1, 8], strides = [1, 1]} : vector<3x8xf32> to vector<1x8xf32>
    %5 = vector.extract_strided_slice %2 {offsets = [2, 0], sizes = [1, 8], strides = [1, 1]} : vector<3x8xf32> to vector<1x8xf32>
    %6 = arith.mulf %0, %1 : vector<32x8xf32>
    %cst = arith.constant dense<0.000000e+00> : vector<8xf32>
    %7 = vector.multi_reduction <add>, %6, %cst [0] : vector<32x8xf32> to vector<8xf32>
    %8 = vector.shape_cast %7 : vector<8xf32> to vector<1x8xf32>
    %9 = math.log %5 : vector<1x8xf32>
    %10 = arith.addf %8, %3 : vector<1x8xf32>
    %11 = arith.addf %10, %4 : vector<1x8xf32>
    %12 = arith.subf %11, %9 : vector<1x8xf32>
    %cst_5 = arith.constant 4.60517025 : f32
    %13 = vector.broadcast %cst_5 : f32 to vector<1x8xf32>
    %14 = arith.subf %9, %13 : vector<1x8xf32>
    %cst_6 = arith.constant 7.500000e-01 : f32
    %15 = vector.broadcast %cst_6 : f32 to vector<1x8xf32>
    %16 = arith.mulf %15, %14 : vector<1x8xf32>
    %17 = math.exp %16 : vector<1x8xf32>
    %cst_7 = arith.constant 1.000000e+00 : f32
    %18 = vector.broadcast %cst_7 : f32 to vector<1x8xf32>
    %19 = arith.minimumf %17, %18 : vector<1x8xf32>
    %20 = arith.mulf %19, %12 : vector<1x8xf32>
    %21 = arith.mulf %20, %12 : vector<1x8xf32>
    %c0_8 = arith.constant 0 : index
    %c0_9 = arith.constant 0 : index
    %22 = vector.load %arg4[%c0_8, %c0_9] : memref<1x8xf32, #tpu.memory_space<vmem>>, vector<1x8xf32>
    tpu.vector_store %arg4[%c0_8, %c0_9], %21 {strides = array<i32>} : memref<1x8xf32, #tpu.memory_space<vmem>>, vector<1x8xf32>,
    return
  }
  func.func @transform_0(%arg0: i32) -> (i32, i32) {
    %c0_i32 = arith.constant 0 : i32
    %c0_i32_0 = arith.constant 0 : i32
    return %c0_i32, %arg0 : i32, i32
  }
  func.func @transform_1(%arg0: i32) -> (i32, i32) {
    %c0_i32 = arith.constant 0 : i32
    %c0_i32_0 = arith.constant 0 : i32
    return %c0_i32, %arg0 : i32, i32
  }
  func.func @transform_2(%arg0: i32) -> (i32, i32) {
    %c0_i32 = arith.constant 0 : i32
    %c0_i32_0 = arith.constant 0 : i32
    return %c0_i32, %arg0 : i32, i32
  }
  func.func @transform_3(%arg0: i32) -> (i32, i32) {
    %c0_i32 = arith.constant 0 : i32
    %c0_i32_0 = arith.constant 0 : i32
    return %c0_i32, %arg0 : i32, i32
  }
}

</mosaic_0001>

<bundles_post_ra>
// kernel: tpu_custom_call.1
= control target key start
LH: loop header
LB: loop body
LE: loop exit
PB: predicated region body
PF: predicated region fallthrough
CT: control target
= control target key end

     0   :  { %vm28_vm0 = vcmask 64512   ;;  %s169_s0 = inlined_call_operand.vmem [shape: f32[32,8], index: 0, kind: input, shape index: {}]   ;;  %s170_s1 = inlined_call_operand.vmem [shape: f32[32,8], index: 1, kind: input, shape index: {}]   ;;  %s171_s2 = inlined_call_operand.vmem [shape: f32[3,8], index: 2, kind: input, shape index: {}]   ;;  %s172_s3 = inlined_call_operand.hbm [shape: f32[1,8], index: 3, kind: output, shape index: {}]  }
   0x1   :  { %v15_v0 = vld [vmem:[%s169_s0] sm:$0xff]  ;;  %v16_v1 = vld [vmem:[%s169_s0 + $0x8] sm:$0xff]  ;;  %v17_v2 = vld [vmem:[%s169_s0 + $0x10] sm:$0xff] }
   0x2   :  { %v18_v3 = vld [vmem:[%s169_s0 + $0x18] sm:$0xff]  ;;  %v19_v4 = vld [vmem:[%s170_s1] sm:$0xff]  ;;  %v20_v5 = vld [vmem:[%s170_s1 + $0x8] sm:$0xff] }
   0x3   :  { %v21_v6 = vld [vmem:[%s170_s1 + $0x10] sm:$0xff]  ;;  %v22_v7 = vld [vmem:[%s170_s1 + $0x18] sm:$0xff]  ;;  %v23_v8 = vld [vmem:[%s171_s2] sm:$0x7]  ;;  %v24_v9 = vmul.f32 %v19_v4, %v15_v0  ;;  %v25_v10 = vmul.f32 %v20_v5, %v16_v1 }
   0x4   :  { %v26_v11 = vmul.f32 %v21_v6, %v17_v2  ;;  %v27_v12 = vmul.f32 %v22_v7, %v18_v3  ;;  %81 = vlog2.f32 %v23_v8 }
   0x5   :  { %8 = vsyncpa [#allocation3], 0  ;;  %v29_v13 = vsel %vm28_vm0, %v24_v9, 0.0  ;;  %v30_v14 = vsel %vm28_vm0, %v25_v10, 0.0  ;;  %v46_v31 = vrot.slane %v23_v8, 1  ;;  %s109_s0 = smov [#allocation2]  }
   0x6   :  { %v31_v15 = vadd.f32 %v30_v14, %v29_v13  ;;  %v32_v16 = vsel %vm28_vm0, %v26_v11, 0.0  ;;  %v34_v17 = vsel %vm28_vm0, %v27_v12, 0.0  ;;  %s71_s1 = sshll.u32 %s109_s0, 4  ;;  %vm63_vm1 = vcmask 59394   ;;  %s72_s1 = int_to_ptr.vmem [resolvable:$true] %s71_s1 }
   0x7   :  { %s85_s2 = scalar_lea.vmem %s72_s1, 16  ;;  %s89_s30 = scalar_lea.vmem %s72_s1, 32 }
   0x8   :  { %v33_v18 = vadd.f32 %v32_v16, %v31_v15  ;;  %p86_p0 = scmp.ne.s32.totalorder %s72_s1, %s85_s2  ;;  %p90_p1 = scmp.lt.s32.totalorder %s72_s1, %s72_s1 }
   0x9   :  { %p91_p2 = scmp.lt.s32.totalorder %s89_s30, %s85_s2 }
   0xa   :  { %v35_v19 = vadd.f32 %v34_v17, %v33_v18 }
   0xb   :  { %p92_p3 = por %p91_p2, %p90_p1 }
   0xc   :  { %v36_v20 = vrot.slane %v35_v19, 4 }
   0xd   :  { %p93_p4 = pnand %p92_p3, %p86_p0 }
   0xe   :  { %v82_v21 = vpop.eup %81  ;;  %v37_v22 = vadd.f32 %v36_v20, %v35_v19 }
   0xf   :  { %v43_v23 = vmul.f32 0.6931472, %v82_v21 }
  0x10   :  { %v38_v24 = vrot.slane %v37_v22, 2 }
  0x11   :  { %v79_v25 = vadd.f32 -4.6051702, %v43_v23  ;;  %v50_v33 = vrot.slane %v43_v23, 2 }
  0x12   :  { %v39_v26 = vadd.f32 %v38_v24, %v37_v22 }
  0x13   :  { %v54_v27 = vmul.f32 0.75, %v79_v25 }
  0x14   :  { %v40_v28 = vrot.slane %v39_v26, 1 }
  0x15   :  { %v55_v29 = vmul.f32 1.442695, %v54_v27 }
  0x16   :  { %v41_v30 = vadd.f32 %v40_v28, %v39_v26 }
  0x17   :  { %83 = vpow2.f32 %v55_v29 }
  0x18   :  { %v44_v32 = vadd.f32 %v41_v30, %v23_v8 }
  0x1a   :  { %v48_v34 = vadd.f32 %v46_v31, %v44_v32 }
  0x1c   :  { %v52_v35 = vsub.f32 %v48_v34, %v50_v33 }
  0x1e   :  { %v59_v36 = vrot.slane %v52_v35, 6 }
  0x21   :  { %v84_v37 = vpop.eup %83 }
  0x22   :  { %v57_v38 = vmin.f32 %v84_v37, 1.0 }
  0x24   :  { %v61_v39 = vmul.f32 %v59_v36, %v57_v38 }
  0x26   :  { %v62_v40 = vmul.f32 %v61_v39, %v59_v36 }
  0x28   :  { %64 = vst.msk [vmem:[#allocation2 - $0x2] sm:$0x4] %vm63_vm1, %v62_v40 }
  0x29   :  { %96 = shalt.err (!%p93_p4)
}
  0x2a   :  { %s97_s6 = scalar_lea.hbm %s172_s3, 16 }
  0x2b   :  { %p98_p5 = scmp.ne.s32.totalorder %s172_s3, %s97_s6  ;;  %p101_p6 = scmp.lt.u32.totalorder %s97_s6, %s172_s3 }
  0x2d   :  { %p103_p7 = pnand %p101_p6, %p98_p5 }
  0x2f   :  { %106 = shalt.err (!%p103_p7)
}
  0x30   :  { %74 = dma.vmem_to_hbm [thread:$0]  %s72_s1, 16, %s172_s3, [#allocation3]  }
  0x31   :  { %107 = dma.done.wait [#allocation3], 16  }
  0x32   :  { %108 = vsyncadd [#allocation3], 4294967280 }
  0x33   :  { %78 = vsyncpa [#allocation3], 1 }

</bundles_post_ra>
